<compile_context>
chip_gen: v7x
topology: tpu7x:2x2x1
jax: 0.10.0
libtpu: 0.0.40
codegen_flags: <defaults>
</compile_context>

<pallas_src>
import functools
import numpy as np
import jax
import jax.numpy as jnp
from jax.experimental import pallas as pl
from jax.experimental.pallas import tpu as pltpu

# ---- synthetic configSetting -------------------------------------------------
OUT_CHANNELS = 32      # configSetting.out_channels
ALPHA = 0.5            # configSetting.alpha
BETA = 0.5             # configSetting.beta
BETA_ON = True         # configSetting.beta_on  (the branch implemented here)
# NOTE: self.dnn is defined in __init__ but never used in forward -> not built.


def _predictor_kernel(sf_ref, df_ref, w_ref, out_ref, *,
                      C, alpha, beta, apply_sigmoid):
    """One tile of TE edges, feature-major layout (features on sublanes,
    edges on lanes).

    sf_ref: [2C+2, TE]  rows = [ z_self[src]^T | z_out[src]^T (C+1) | deg_out ]
    df_ref: [2C+2, TE]  rows = [ z_self[dst]^T | z_in[dst]^T  (C+1) | deg_in  ]
    w_ref : [2C, 2C+1]  fused bias-augmented block-diagonal weight (transposed)
    out   : [1, TE]     lane-dense per-edge score
    """
    sf = sf_ref[...]
    df = df_ref[...]
    te = sf.shape[1]

    # x_aug^T = [ z_self[src]^T ; z_self[dst]^T ; ones ]  -> [2C+1, TE]
    xt = jnp.concatenate(
        [sf[:C, :], df[:C, :], jnp.ones((1, te), jnp.float32)], axis=0)

    # a^T = [ align_in(z_self[src])^T ; align_out(z_self[dst])^T ]  (bias folded)
    at = jnp.dot(w_ref[...], xt, preferred_element_type=jnp.float32)  # [2C, TE]

    # matching z features: [ z_in[dst][:, :C]^T ; z_out[src][:, :C]^T ]
    zt = jnp.concatenate([df[C:2 * C, :], sf[C:2 * C, :]], axis=0)     # [2C, TE]

    # alpha * (dot_in + dot_out): sublane reduce -> lane-dense [1, TE]
    dots = jnp.sum(at * zt, axis=0, keepdims=True)

    # beta * ((z_out[src][:,-1] + deg_out) + (z_in[dst][:,-1] + deg_in))
    tail = (jnp.sum(sf[2 * C:2 * C + 2, :], axis=0, keepdims=True)
            + jnp.sum(df[2 * C:2 * C + 2, :], axis=0, keepdims=True))

    value = alpha * dots + beta * tail
    out_ref[...] = jax.nn.sigmoid(value) if apply_sigmoid else value


def _normalized_degree(idx, num_nodes):
    # PyTorch: degree(idx) / (n_unique - 1), then F.normalize(dim=0).
    # The uniform positive scale 1/(n_unique - 1) cancels exactly under the L2
    # normalization, so it is dropped -> no host sync on set(edge_index).
    d = jnp.zeros((num_nodes,), jnp.float32).at[idx].add(1.0)
    return d / jnp.maximum(jnp.linalg.norm(d), 1e-12)


def predictor_pallas(z_in, z_out, z_self, edge_index,
                     w_in, b_in, w_out, b_out,
                     sigmoid=True, tile_e=512):
    """Forward pass of Predictor (beta_on=True).  Fully jit-able."""
    src = edge_index[0]
    dst = edge_index[1]
    E = int(src.shape[0])
    N, C = int(z_self.shape[0]), int(z_self.shape[1])

    # ---- per-node packed tables (glue) ----
    deg_out_n = _normalized_degree(src, N)
    deg_in_n = _normalized_degree(dst, N)
    src_table = jnp.concatenate(
        [z_self, z_out, deg_out_n[:, None]], axis=1).astype(jnp.float32)  # [N, 2C+2]
    dst_table = jnp.concatenate(
        [z_self, z_in, deg_in_n[:, None]], axis=1).astype(jnp.float32)    # [N, 2C+2]

    # ---- pad edges to a multiple of tile_e, one gather per side, transpose ----
    n_tiles = int(pl.cdiv(E, tile_e))
    E_pad = n_tiles * tile_e
    if E_pad != E:
        pad = E_pad - E
        src = jnp.concatenate([src, jnp.zeros((pad,), src.dtype)])
        dst = jnp.concatenate([dst, jnp.zeros((pad,), dst.dtype)])
    sf = src_table[src].T     # [2C+2, E_pad]  (features on sublanes, edges on lanes)
    df = dst_table[dst].T     # [2C+2, E_pad]

    # ---- fused block-diagonal weight with bias row (x @ W + b == both Linears) ----
    zc = jnp.zeros((C, C), jnp.float32)
    w_aug = jnp.concatenate([
        jnp.concatenate([w_in, zc], axis=1),
        jnp.concatenate([zc, w_out], axis=1),
        jnp.concatenate([b_in, b_out], axis=1),
    ], axis=0).astype(jnp.float32)                 # [2C+1, 2C]
    w_t = w_aug.T                                  # [2C, 2C+1]

    kernel = functools.partial(_predictor_kernel, C=C, alpha=ALPHA, beta=BETA,
                               apply_sigmoid=sigmoid)

    F = 2 * C + 2
    out = pl.pallas_call(
        kernel,
        out_shape=jax.ShapeDtypeStruct((1, E_pad), jnp.float32),
        grid=(n_tiles,),
        in_specs=[
            pl.BlockSpec((F, tile_e), lambda i: (0, i)),        # src features^T
            pl.BlockSpec((F, tile_e), lambda i: (0, i)),        # dst features^T
            pl.BlockSpec((2 * C, 2 * C + 1), lambda i: (0, 0)), # fused weight
        ],
        out_specs=pl.BlockSpec((1, tile_e), lambda i: (0, i)),  # lane-dense output
        compiler_params=pltpu.CompilerParams(
            dimension_semantics=("parallel",)),
    )(sf, df, w_t)

    return out[0, :E]

# TODO(synk): beta_on=False branch uses z_in/z_out with C columns (different
# shape contract); only the beta_on=True branch is implemented here.


def predictor_ref(z_in, z_out, z_self, edge_index,
                  w_in, b_in, w_out, b_out, sigmoid=True):
    """Pure-JAX reference mirroring the PyTorch forward (beta_on=True)."""
    src, dst = edge_index[0], edge_index[1]
    num_nodes = int(jnp.max(edge_index)) + 1
    n_unique = len(set(np.asarray(edge_index).flatten().tolist()))

    def norm_deg(idx):
        d = jnp.zeros((num_nodes,), jnp.float32).at[idx].add(1.0)
        d = d / float(n_unique - 1)
        return d / jnp.maximum(jnp.linalg.norm(d), 1e-12)

    deg_out = norm_deg(src)[src]
    deg_in = norm_deg(dst)[dst]
    a_out = z_self[dst] @ w_out + b_out[0]
    a_in = z_self[src] @ w_in + b_in[0]
    value = ((deg_out + z_out[src][:, -1]) * BETA
             + jnp.sum(z_out[src][:, :-1] * a_out, axis=1) * ALPHA
             + (deg_in + z_in[dst][:, -1]) * BETA
             + jnp.sum(a_in * z_in[dst][:, :-1], axis=1) * ALPHA)
    return jax.nn.sigmoid(value) if sigmoid else value


if __name__ == "__main__":
    key = jax.random.PRNGKey(0)
    C = OUT_CHANNELS
    N = 6          # nodes
    E = 16         # edges

    k1, k2, k3, k4, k5, k6, k7 = jax.random.split(key, 7)
    z_self = jax.random.normal(k1, (N, C), jnp.float32)
    z_in = jax.random.normal(k2, (N, C + 1), jnp.float32)
    z_out = jax.random.normal(k3, (N, C + 1), jnp.float32)

    # deterministic edge list covering all N nodes
    src = (np.arange(E) % N).astype(np.int32)
    dst = ((np.arange(E) * 3 + 1) % N).astype(np.int32)
    edge_index = jnp.asarray(np.stack([src, dst]), dtype=jnp.int32)  # [2, E]

    # deterministic "Linear" params (stored as [in, out] so y = x @ W + b)
    w_in = 0.1 * jax.random.normal(k4, (C, C), jnp.float32)
    b_in = 0.1 * jax.random.normal(k5, (1, C), jnp.float32)
    w_out = 0.1 * jax.random.normal(k6, (C, C), jnp.float32)
    b_out = 0.1 * jax.random.normal(k7, (1, C), jnp.float32)

    pred = jax.jit(functools.partial(predictor_pallas, sigmoid=True, tile_e=512))
    out = pred(z_in, z_out, z_self, edge_index, w_in, b_in, w_out, b_out)
    jax.block_until_ready(out)

    ref = predictor_ref(z_in, z_out, z_self, edge_index,
                        w_in, b_in, w_out, b_out, sigmoid=True)
    np.testing.assert_allclose(np.asarray(out), np.asarray(ref),
                               rtol=2e-5, atol=2e-5)
    print("KERNEL_OK")
</pallas_src>

<mosaic_0001>
module attributes {stable_mosaic.version = 11 : i64} {
  func.func private @main(%arg0: i32) attributes {dimension_semantics = [#tpu.dimension_semantics<core_parallel>], iteration_bounds = array<i64: 2>, tpu.core_type = #tpu.core_type<sc_scalar_subcore>, window_params = []} {
    return
  }
}

module attributes {stable_mosaic.version = 11 : i64} {
  func.func private @main(%arg0: i32) attributes {dimension_semantics = [#tpu.dimension_semantics<core_parallel>], iteration_bounds = array<i64: 2>, tpu.core_type = #tpu.core_type<sc_scalar_subcore>, window_params = []} {
    return
  }
}

module attributes {stable_mosaic.version = 11 : i64} {
  func.func @_predictor_kernel(%arg0: i32, %arg1: memref<66x512xf32, #tpu.memory_space<vmem>>, %arg2: memref<66x512xf32, #tpu.memory_space<vmem>>, %arg3: memref<64x65xf32, #tpu.memory_space<vmem>>, %arg4: memref<1x512xf32, #tpu.memory_space<vmem>>) attributes {dimension_semantics = [#tpu.dimension_semantics<parallel>], iteration_bounds = array<i64: 1>, scalar_prefetch = 0 : i64, scratch_operands = 0 : i64, tpu.core_type = #tpu.core_type<tc>, window_params = [{transform_indices = @transform_0, window_bounds = array<i64: 66, 512>}, {transform_indices = @transform_1, window_bounds = array<i64: 66, 512>}, {pipeline_mode = #tpu.pipeline_mode<synchronous>, transform_indices = @transform_2, window_bounds = array<i64: 64, 65>}, {transform_indices = @transform_3, window_bounds = array<i64: 1, 512>}]} {
    %c0 = arith.constant 0 : index
    %c0_0 = arith.constant 0 : index
    %0 = vector.load %arg1[%c0, %c0_0] : memref<66x512xf32, #tpu.memory_space<vmem>>, vector<66x512xf32>
    %c0_1 = arith.constant 0 : index
    %c0_2 = arith.constant 0 : index
    %1 = vector.load %arg2[%c0_1, %c0_2] : memref<66x512xf32, #tpu.memory_space<vmem>>, vector<66x512xf32>
    %2 = vector.extract_strided_slice %0 {offsets = [0, 0], sizes = [32, 512], strides = [1, 1]} : vector<66x512xf32> to vector<32x512xf32>
    %3 = vector.extract_strided_slice %1 {offsets = [0, 0], sizes = [32, 512], strides = [1, 1]} : vector<66x512xf32> to vector<32x512xf32>
    %cst = arith.constant 1.000000e+00 : f32
    %4 = vector.broadcast %cst : f32 to vector<1x512xf32>
    %5 = tpu.concatenate %2, %3, %4 in 0 : vector<32x512xf32>, vector<32x512xf32>, vector<1x512xf32> -> vector<65x512xf32>
    %c0_3 = arith.constant 0 : index
    %c0_4 = arith.constant 0 : index
    %6 = vector.load %arg3[%c0_3, %c0_4] : memref<64x65xf32, #tpu.memory_space<vmem>>, vector<64x65xf32>
    %cst_5 = arith.constant dense<0.000000e+00> : vector<64x512xf32>
    %7 = tpu.matmul %6, %5, %cst_5 {dimension_numbers = #tpu.dot_dimension_numbers<[1], [0], [0], [1], [0, 0, 1, 1], [], []>} : vector<64x65xf32>, vector<65x512xf32>, vector<64x512xf32> -> vector<64x512xf32>
    %8 = vector.extract_strided_slice %1 {offsets = [32, 0], sizes = [32, 512], strides = [1, 1]} : vector<66x512xf32> to vector<32x512xf32>
    %9 = vector.extract_strided_slice %0 {offsets = [32, 0], sizes = [32, 512], strides = [1, 1]} : vector<66x512xf32> to vector<32x512xf32>
    %10 = tpu.concatenate %8, %9 in 0 : vector<32x512xf32>, vector<32x512xf32> -> vector<64x512xf32>
    %11 = arith.mulf %7, %10 : vector<64x512xf32>
    %cst_6 = arith.constant dense<0.000000e+00> : vector<512xf32>
    %12 = vector.multi_reduction <add>, %11, %cst_6 [0] : vector<64x512xf32> to vector<512xf32>
    %13 = vector.shape_cast %12 : vector<512xf32> to vector<1x512xf32>
    %14 = vector.extract_strided_slice %0 {offsets = [64, 0], sizes = [2, 512], strides = [1, 1]} : vector<66x512xf32> to vector<2x512xf32>
    %cst_7 = arith.constant dense<0.000000e+00> : vector<512xf32>
    %15 = vector.multi_reduction <add>, %14, %cst_7 [0] : vector<2x512xf32> to vector<512xf32>
    %16 = vector.shape_cast %15 : vector<512xf32> to vector<1x512xf32>
    %17 = vector.extract_strided_slice %1 {offsets = [64, 0], sizes = [2, 512], strides = [1, 1]} : vector<66x512xf32> to vector<2x512xf32>
    %cst_8 = arith.constant dense<0.000000e+00> : vector<512xf32>
    %18 = vector.multi_reduction <add>, %17, %cst_8 [0] : vector<2x512xf32> to vector<512xf32>
    %19 = vector.shape_cast %18 : vector<512xf32> to vector<1x512xf32>
    %20 = arith.addf %16, %19 : vector<1x512xf32>
    %cst_9 = arith.constant 5.000000e-01 : f32
    %21 = vector.broadcast %cst_9 : f32 to vector<1x512xf32>
    %22 = arith.mulf %21, %13 : vector<1x512xf32>
    %cst_10 = arith.constant 5.000000e-01 : f32
    %23 = vector.broadcast %cst_10 : f32 to vector<1x512xf32>
    %24 = arith.mulf %23, %20 : vector<1x512xf32>
    %25 = arith.addf %22, %24 : vector<1x512xf32>
    %26 = arith.negf %25 : vector<1x512xf32>
    %27 = math.exp %26 : vector<1x512xf32>
    %cst_11 = arith.constant 1.000000e+00 : f32
    %28 = vector.broadcast %cst_11 : f32 to vector<1x512xf32>
    %29 = arith.addf %28, %27 : vector<1x512xf32>
    %30 = arith.divf %28, %29 : vector<1x512xf32>
    %c0_12 = arith.constant 0 : index
    %c0_13 = arith.constant 0 : index
    %31 = vector.load %arg4[%c0_12, %c0_13] : memref<1x512xf32, #tpu.memory_space<vmem>>, vector<1x512xf32>
    tpu.vector_store %arg4[%c0_12, %c0_13], %30 {strides = array<i32>} : memref<1x512xf32, #tpu.memory_space<vmem>>, vector<1x512xf32>,
    return
  }
  func.func @transform_0(%arg0: i32) -> (i32, i32) {
    %c0_i32 = arith.constant 0 : i32
    %c0_i32_0 = arith.constant 0 : i32
    return %c0_i32, %arg0 : i32, i32
  }
  func.func @transform_1(%arg0: i32) -> (i32, i32) {
    %c0_i32 = arith.constant 0 : i32
    %c0_i32_0 = arith.constant 0 : i32
    return %c0_i32, %arg0 : i32, i32
  }
  func.func @transform_2(%arg0: i32) -> (i32, i32) {
    %c0_i32 = arith.constant 0 : i32
    %c0_i32_0 = arith.constant 0 : i32
    %c0_i32_1 = arith.constant 0 : i32
    return %c0_i32, %c0_i32_0 : i32, i32
  }
  func.func @transform_3(%arg0: i32) -> (i32, i32) {
    %c0_i32 = arith.constant 0 : i32
    %c0_i32_0 = arith.constant 0 : i32
    return %c0_i32, %arg0 : i32, i32
  }
}

</mosaic_0001>

<bundles_post_ra>
// kernel: predictor_pallas.1
= control target key start
LH: loop header
LB: loop body
LE: loop exit
PB: predicated region body
PF: predicated region fallthrough
CT: control target
= control target key end

     0   :  { %v643_v3 = vmov 0.0   ;;  %vm119_vm0 = vcmask 1040384   ;;  %v644_v49 = vmov 1.0   ;;  %vm94_vm1 = vcmask 531456   ;;  %s949_s0 = inlined_call_operand.vmem [shape: f32[66,512], index: 0, kind: input, shape index: {}]   ;;  %s950_s1 = inlined_call_operand.vmem [shape: f32[66,512], index: 1, kind: input, shape index: {}]   ;;  %s951_s2 = inlined_call_operand.vmem [shape: f32[64,65], index: 2, kind: input, shape index: {}]   ;;  %s952_s3 = inlined_call_operand.vmem [shape: f32[1,512], index: 3, kind: output, shape index: {}]  }
   0x1   :  { %v15_v0 = vld [vmem:[%s949_s0 + $0x8] sm:$0xff]  ;;  %v17_v2 = vld [vmem:[%s949_s0 + $0x18] sm:$0xff]  ;;  %187 = vmatprep.mubr.f32.mxu0 %v643_v3  ;;  %300 = vmatprep.mubr.f32.mxu1 %v643_v3  ;;  %v14_v6 = vld [vmem:[%s949_s0] sm:$0xff]  ;;  %vm433_vm2 = vcmask 1041408  }
   0x2   :  { %v19_v1 = vld [vmem:[%s949_s0 + $0x28] sm:$0xff]  ;;  %v21_v5 = vld [vmem:[%s949_s0 + $0x38] sm:$0xff]  ;;  %v18_v7 = vld [vmem:[%s949_s0 + $0x20] sm:$0xff] }
   0x3   :  { %v592_v4 = vpack.c.bf16 %v19_v1, %v15_v0  ;;  %v608_v8 = vpack.c.bf16 %v21_v5, %v17_v2  ;;  %v594_v9 = vpack.c.bf16 %v18_v7, %v14_v6  ;;  %v16_v10 = vld [vmem:[%s949_s0 + $0x10] sm:$0xff]  ;;  %v23_v12 = vld [vmem:[%s949_s0 + $0x48] sm:$0xff]  ;;  %v25_v15 = vld [vmem:[%s949_s0 + $0x58] sm:$0xff] }
   0x4   :  { %v20_v11 = vld [vmem:[%s949_s0 + $0x30] sm:$0xff]  ;;  %v27_v14 = vld [vmem:[%s949_s0 + $0x68] sm:$0xff]  ;;  %v29_v16 = vld [vmem:[%s949_s0 + $0x78] sm:$0xff] }
   0x5   :  { %593 = vmatprep.subr.bf16.mxu0 %v592_v4  ;;  %v610_v13 = vpack.c.bf16 %v20_v11, %v16_v10  ;;  %609 = vmatprep.subr.bf16.mxu1 %v608_v8  ;;  %v596_v17 = vpack.c.bf16 %v27_v14, %v23_v12  ;;  %v612_v18 = vpack.c.bf16 %v29_v16, %v25_v15  ;;  %v22_v19 = vld [vmem:[%s949_s0 + $0x40] sm:$0xff]  ;;  %v24_v21 = vld [vmem:[%s949_s0 + $0x50] sm:$0xff]  ;;  %v51_v24 = vld [vmem:[%s950_s1 + $0x8] sm:$0xff] }
   0x6   :  { %595 = vmatpush1.bf16.msra.mxu0 %v594_v9  ;;  %v26_v20 = vld [vmem:[%s949_s0 + $0x60] sm:$0xff]  ;;  %v28_v23 = vld [vmem:[%s949_s0 + $0x70] sm:$0xff]  ;;  %v55_v25 = vld [vmem:[%s950_s1 + $0x28] sm:$0xff] }
   0x7   :  { %611 = vmatpush1.bf16.msra.mxu1 %v610_v13  ;;  %v598_v22 = vpack.c.bf16 %v26_v20, %v22_v19  ;;  %597 = vmatprep.subr.bf16.mxu0 %v596_v17  ;;  %v614_v26 = vpack.c.bf16 %v28_v23, %v24_v21  ;;  %v600_v27 = vpack.c.bf16 %v55_v25, %v51_v24  ;;  %v53_v28 = vld [vmem:[%s950_s1 + $0x18] sm:$0xff]  ;;  %v50_v30 = vld [vmem:[%s950_s1] sm:$0xff]  ;;  %v52_v33 = vld [vmem:[%s950_s1 + $0x10] sm:$0xff] }
   0x8   :  { %613 = vmatprep.subr.bf16.mxu1 %v612_v18  ;;  %v57_v29 = vld [vmem:[%s950_s1 + $0x38] sm:$0xff]  ;;  %v54_v32 = vld [vmem:[%s950_s1 + $0x20] sm:$0xff]  ;;  %v56_v34 = vld [vmem:[%s950_s1 + $0x30] sm:$0xff] }
   0x9   :  { %v616_v31 = vpack.c.bf16 %v57_v29, %v53_v28  ;;  %v602_v35 = vpack.c.bf16 %v54_v32, %v50_v30  ;;  %v59_v36 = vld [vmem:[%s950_s1 + $0x48] sm:$0xff]  ;;  %v61_v38 = vld [vmem:[%s950_s1 + $0x58] sm:$0xff]  ;;  %v618_v39 = vpack.c.bf16 %v56_v34, %v52_v33  ;;  %v58_v42 = vld [vmem:[%s950_s1 + $0x40] sm:$0xff] }
   0xa   :  { %599 = vmatpush1.bf16.msra.mxu0 %v598_v22  ;;  %v63_v37 = vld [vmem:[%s950_s1 + $0x68] sm:$0xff]  ;;  %v65_v41 = vld [vmem:[%s950_s1 + $0x78] sm:$0xff]  ;;  %v62_v43 = vld [vmem:[%s950_s1 + $0x60] sm:$0xff] }
   0xb   :  { %615 = vmatpush1.bf16.msra.mxu1 %v614_v26  ;;  %601 = vmatprep.subr.bf16.mxu0 %v600_v27  ;;  %v604_v40 = vpack.c.bf16 %v63_v37, %v59_v36  ;;  %v620_v44 = vpack.c.bf16 %v65_v41, %v61_v38  ;;  %v60_v45 = vld [vmem:[%s950_s1 + $0x50] sm:$0xff]  ;;  %v606_v47 = vpack.c.bf16 %v62_v43, %v58_v42  ;;  %v86_v50 = vld [vmem:[%s951_s2] sm:$0xff]  ;;  %v87_v51 = vld [vmem:[%s951_s2 + $0x8] sm:$0xff] }
   0xc   :  { %617 = vmatprep.subr.bf16.mxu1 %v616_v31  ;;  %v64_v46 = vld [vmem:[%s950_s1 + $0x70] sm:$0xff]  ;;  %v89_v53 = vld [vmem:[%s951_s2 + $0x18] sm:$0xff]  ;;  %v90_v54 = vld [vmem:[%s951_s2 + $0x20] sm:$0xff] }
   0xd   :  { %v622_v48 = vpack.c.bf16 %v64_v46, %v60_v45  ;;  %v88_v52 = vld [vmem:[%s951_s2 + $0x10] sm:$0xff]  ;;  %v91_v55 = vld [vmem:[%s951_s2 + $0x28] sm:$0xff]  ;;  %v93_v57 = vld [vmem:[%s951_s2 + $0x38] sm:$0xff] }
   0xe   :  { %603 = vmatpush1.bf16.msra.mxu0 %v602_v35  ;;  %v92_v56 = vld [vmem:[%s951_s2 + $0x30] sm:$0xff]  ;;  %v66_v61 = vld [vmem:[%s950_s1 + $0x80] sm:$0xff]  ;;  %v67_v1 = vld [vmem:[%s950_s1 + $0x88] sm:$0xff] }
   0xf   :  { %619 = vmatpush1.bf16.msra.mxu1 %v618_v39  ;;  %605 = vmatprep.subr.bf16.mxu0 %v604_v40  ;;  %v68_v62 = vld [vmem:[%s950_s1 + $0x90] sm:$0xff]  ;;  %v70_v0 = vld [vmem:[%s950_s1 + $0xa0] sm:$0xff]  ;;  %v69_v4 = vld [vmem:[%s950_s1 + $0x98] sm:$0xff] }
  0x10   :  { %621 = vmatprep.subr.bf16.mxu1 %v620_v44  ;;  %v72_v2 = vld [vmem:[%s950_s1 + $0xb0] sm:$0xff]  ;;  %v73_v6 = vld [vmem:[%s950_s1 + $0xb8] sm:$0xff]  ;;  %v74_v16 = vld [vmem:[%s950_s1 + $0xc0] sm:$0xff] }
  0x11   :  { %v46_v17 = vld [vmem:[%s949_s0 + $0x100] sm:$0x3]  ;;  %v76_v22 = vld [vmem:[%s950_s1 + $0xd0] sm:$0xff]  ;;  %v75_v23 = vld [vmem:[%s950_s1 + $0xc8] sm:$0xff] }
  0x12   :  { %607 = vmatpush1.bf16.msra.mxu0 %v606_v47  ;;  %v82_v18 = vld [vmem:[%s950_s1 + $0x100] sm:$0x3]  ;;  %v77_v27 = vld [vmem:[%s950_s1 + $0xd8] sm:$0xff]  ;;  %v48_v28 = vld [vmem:[%s949_s0 + $0x110] sm:$0x3]  ;;  %v434_v36 = vsel %vm433_vm2, %v46_v17, 0.0 }
  0x13   :  { %623 = vmatpush1.bf16.msra.mxu1 %v622_v48  ;;  %568 = vmatprep.subr.msk.mxu0 %vm119_vm0, %v644_v49  ;;  %v84_v29 = vld [vmem:[%s950_s1 + $0x110] sm:$0x3]  ;;  %v78_v34 = vld [vmem:[%s950_s1 + $0xe0] sm:$0xff]  ;;  %v462_v37 = vsel %vm433_vm2, %v82_v18, 0.0  ;;  %v79_v41 = vld [vmem:[%s950_s1 + $0xe8] sm:$0xff]  ;;  %v448_v46 = vsel %vm433_vm2, %v48_v28, 0.0 }
  0x14   :  { %578 = vmatprep.subr.msk.mxu1 %vm119_vm0, %v644_v49  ;;  %v80_v35 = vld [vmem:[%s950_s1 + $0xf0] sm:$0xff]  ;;  %v47_v42 = vld [vmem:[%s949_s0 + $0x108] sm:$0x3]  ;;  %v476_v47 = vsel %vm433_vm2, %v84_v29, 0.0  ;;  %v49_v48 = vld [vmem:[%s949_s0 + $0x118] sm:$0x3] }
  0x15   :  { %v83_v43 = vld [vmem:[%s950_s1 + $0x108] sm:$0x3] }
  0x16   :  { %569 = vmatpush1.msk.msra.mxu0 %vm119_vm0, %v644_v49 }
  0x17   :  { %579 = vmatpush1.msk.msra.mxu1 %vm119_vm0, %v644_v49  ;;  %570 = vmatmul.mubr.msk.f32.vlgmr.msra.gmra.mrb[0].mxu0 %vm94_vm1, %v86_v50  ;;  %v85_v49 = vld [vmem:[%s950_s1 + $0x118] sm:$0x3] }
  0x18   :  { %580 = vmatmul.mubr.msk.f32.vlgmr.msra.gmra.mrb[0].mxu1 %vm94_vm1, %v86_v50  ;;  %193 = vmatprep.mubr.f32.mxu0 %v643_v3 }
  0x19   :  { %306 = vmatprep.mubr.f32.mxu1 %v643_v3 }
  0x1b   :  { %571 = vmatmul.mubr.msk.f32.gmra.mrb[2].mxu0 %vm94_vm1, %v87_v51 }
  0x1c   :  { %581 = vmatmul.mubr.msk.f32.gmra.mrb[2].mxu1 %vm94_vm1, %v87_v51  ;;  %199 = vmatprep.mubr.f32.mxu0 %v643_v3 }
  0x1d   :  { %312 = vmatprep.mubr.f32.mxu1 %v643_v3 }
  0x1f   :  { %572 = vmatmul.mubr.msk.f32.gmra.mrb[4].mxu0 %vm94_vm1, %v88_v52 }
  0x20   :  { %582 = vmatmul.mubr.msk.f32.gmra.mrb[4].mxu1 %vm94_vm1, %v88_v52  ;;  %205 = vmatprep.mubr.f32.mxu0 %v643_v3 }
  0x21   :  { %318 = vmatprep.mubr.f32.mxu1 %v643_v3 }
  0x23   :  { %573 = vmatmul.mubr.msk.f32.gmra.mrb[6].mxu0 %vm94_vm1, %v89_v53 }
  0x24   :  { %583 = vmatmul.mubr.msk.f32.gmra.mrb[6].mxu1 %vm94_vm1, %v89_v53  ;;  %211 = vmatprep.mubr.f32.mxu0 %v643_v3  ;;  %v81_v53 = vld [vmem:[%s950_s1 + $0xf8] sm:$0xff] }
  0x25   :  { %324 = vmatprep.mubr.f32.mxu1 %v643_v3 }
  0x27   :  { %574 = vmatmul.mubr.msk.f32.gmra.mrb[8].mxu0 %vm94_vm1, %v90_v54 }
  0x28   :  { %584 = vmatmul.mubr.msk.f32.gmra.mrb[8].mxu1 %vm94_vm1, %v90_v54  ;;  %217 = vmatprep.mubr.f32.mxu0 %v643_v3  ;;  %v435_v54 = vrot.slane %v434_v36, 4 }
  0x29   :  { %330 = vmatprep.mubr.f32.mxu1 %v643_v3 }
  0x2b   :  { %575 = vmatmul.mubr.msk.f32.gmra.mrb[10].mxu0 %vm94_vm1, %v91_v55 }
  0x2c   :  { %585 = vmatmul.mubr.msk.f32.gmra.mrb[10].mxu1 %vm94_vm1, %v91_v55  ;;  %223 = vmatprep.mubr.f32.mxu0 %v643_v3  ;;  %v463_v55 = vrot.slane %v462_v37, 4 }
  0x2d   :  { %336 = vmatprep.mubr.f32.mxu1 %v643_v3 }
  0x2f   :  { %576 = vmatmul.mubr.msk.f32.gmra.mrb[12].mxu0 %vm94_vm1, %v92_v56 }
  0x30   :  { %586 = vmatmul.mubr.msk.f32.gmra.mrb[12].mxu1 %vm94_vm1, %v92_v56  ;;  %229 = vmatprep.mubr.f32.mxu0 %v643_v3 }
  0x31   :  { %342 = vmatprep.mubr.f32.mxu1 %v643_v3  ;;  %v71_v3 = vld [vmem:[%s950_s1 + $0xa8] sm:$0xff] }
  0x33   :  { %577 = vmatmul.mubr.msk.f32.gmra.mrb[14].mxu0 %vm94_vm1, %v93_v57 }
  0x34   :  { %587 = vmatmul.mubr.msk.f32.gmra.mrb[14].mxu1 %vm94_vm1, %v93_v57 }
  0xea   :  { %v189_v58 = vpop.f32.mrb[0].mxu0 }
  0xeb   :  { %v302_v59 = vpop.f32.mrb[0].mxu1  ;;  %v191_v60 = vpop.f32.mrb[1].mxu0  ;;  %v349_v7 = vmul.f32 %v189_v58, %v66_v61  ;;  %v469_v61 = vsel %vm433_vm2, %v83_v43, 0.0 }
  0xec   :  { %v304_v63 = vpop.f32.mrb[1].mxu1  ;;  %v351_v11 = vmul.f32 %v302_v59, %v68_v62  ;;  %v350_v12 = vmul.f32 %v191_v60, %v67_v1  ;;  %v441_v60 = vsel %vm433_vm2, %v47_v42, 0.0  ;;  %v30_v1 = vld [vmem:[%s949_s0 + $0x80] sm:$0xff] }
  0xed   :  { %v352_v19 = vmul.f32 %v304_v63, %v69_v4 }
  0xee   :  { %v195_v5 = vpop.f32.mrb[2].mxu0 }
  0xef   :  { %v353_v8 = vmul.f32 %v195_v5, %v70_v0  ;;  %v308_v9 = vpop.f32.mrb[2].mxu1  ;;  %v197_v10 = vpop.f32.mrb[3].mxu0 }
  0xf0   :  { %v355_v13 = vmul.f32 %v308_v9, %v72_v2  ;;  %v354_v14 = vmul.f32 %v197_v10, %v71_v3  ;;  %v310_v15 = vpop.f32.mrb[3].mxu1  ;;  %v455_v2 = vsel %vm433_vm2, %v49_v48, 0.0  ;;  %v483_v3 = vsel %vm433_vm2, %v85_v49, 0.0 }
  0xf1   :  { %v381_v20 = vadd.f32 %v353_v8, %v349_v7  ;;  %v356_v21 = vmul.f32 %v310_v15, %v73_v6  ;;  %v32_v6 = vld [vmem:[%s949_s0 + $0x90] sm:$0xff]  ;;  %v31_v7 = vld [vmem:[%s949_s0 + $0x88] sm:$0xff]  ;;  %v449_v8 = vrot.slane %v448_v46, 4  ;;  %v477_v9 = vrot.slane %v476_v47, 4 }
  0xf2   :  { %v407_v24 = vadd.f32 %v355_v13, %v351_v11  ;;  %v394_v25 = vadd.f32 %v354_v14, %v350_v12  ;;  %v201_v26 = vpop.f32.mrb[4].mxu0  ;;  %v33_v13 = vld [vmem:[%s949_s0 + $0x98] sm:$0xff]  ;;  %v442_v14 = vrot.slane %v441_v60, 4  ;;  %v470_v15 = vrot.slane %v469_v61, 4 }
  0xf3   :  { %v420_v30 = vadd.f32 %v356_v21, %v352_v19  ;;  %v357_v31 = vmul.f32 %v201_v26, %v74_v16  ;;  %v314_v32 = vpop.f32.mrb[4].mxu1  ;;  %v203_v33 = vpop.f32.mrb[5].mxu0  ;;  %v484_v21 = vrot.slane %v483_v3, 4  ;;  %v436_v26 = vadd.f32 %v435_v54, %v434_v36  ;;  %v37_v36 = vld [vmem:[%s949_s0 + $0xb8] sm:$0xff]  ;;  %v40_v54 = vld [vmem:[%s949_s0 + $0xd0] sm:$0xff] }
  0xf4   :  { %v359_v38 = vmul.f32 %v314_v32, %v76_v22  ;;  %v358_v39 = vmul.f32 %v203_v33, %v75_v23  ;;  %v316_v40 = vpop.f32.mrb[5].mxu1  ;;  %v450_v32 = vadd.f32 %v449_v8, %v448_v46  ;;  %v478_v33 = vadd.f32 %v477_v9, %v476_v47  ;;  %v38_v46 = vld [vmem:[%s949_s0 + $0xc0] sm:$0xff] }
  0xf5   :  { %v382_v44 = vadd.f32 %v381_v20, %v357_v31  ;;  %v360_v45 = vmul.f32 %v316_v40, %v77_v27  ;;  %v456_v20 = vrot.slane %v455_v2, 4  ;;  %v464_v27 = vadd.f32 %v463_v55, %v462_v37  ;;  %v35_v31 = vld [vmem:[%s949_s0 + $0xa8] sm:$0xff]  ;;  %v42_v9 = vld [vmem:[%s949_s0 + $0xe0] sm:$0xff] }
  0xf6   :  { %v408_v50 = vadd.f32 %v407_v24, %v359_v38  ;;  %v395_v51 = vadd.f32 %v394_v25, %v358_v39  ;;  %v207_v52 = vpop.f32.mrb[6].mxu0  ;;  %v34_v25 = vld [vmem:[%s949_s0 + $0xa0] sm:$0xff]  ;;  %v443_v37 = vadd.f32 %v442_v14, %v441_v60  ;;  %v471_v39 = vadd.f32 %v470_v15, %v469_v61  ;;  %v39_v55 = vld [vmem:[%s949_s0 + $0xc8] sm:$0xff]  ;;  %v41_v61 = vld [vmem:[%s949_s0 + $0xd8] sm:$0xff] }
  0xf7   :  { %v421_v56 = vadd.f32 %v420_v30, %v360_v45  ;;  %v361_v57 = vmul.f32 %v207_v52, %v78_v34  ;;  %v320_v58 = vpop.f32.mrb[6].mxu1  ;;  %v209_v59 = vpop.f32.mrb[7].mxu0  ;;  %v36_v30 = vld [vmem:[%s949_s0 + $0xb0] sm:$0xff]  ;;  %v485_v45 = vadd.f32 %v484_v21, %v483_v3  ;;  %v437_v47 = vrot.slane %v436_v26, 2 }
  0xf8   :  { %v363_v62 = vmul.f32 %v320_v58, %v80_v35  ;;  %v362_v63 = vmul.f32 %v209_v59, %v79_v41  ;;  %v322_v0 = vpop.f32.mrb[7].mxu1  ;;  %v44_v14 = vld [vmem:[%s949_s0 + $0xf0] sm:$0xff] }
  0xf9   :  { %v383_v4 = vadd.f32 %v382_v44, %v361_v57  ;;  %v364_v5 = vmul.f32 %v322_v0, %v81_v53  ;;  %v457_v44 = vadd.f32 %v456_v20, %v455_v2  ;;  %v479_v57 = vrot.slane %v478_v33, 2 }
  0xfa   :  { %v409_v10 = vadd.f32 %v408_v50, %v363_v62  ;;  %v396_v11 = vadd.f32 %v395_v51, %v362_v63  ;;  %v213_v12 = vpop.f32.mrb[8].mxu0  ;;  %v465_v51 = vrot.slane %v464_v27, 2  ;;  %v444_v62 = vrot.slane %v443_v37, 2 }
  0xfb   :  { %v422_v16 = vadd.f32 %v421_v56, %v364_v5  ;;  %v365_v17 = vmul.f32 %v213_v12, %v30_v1  ;;  %v326_v18 = vpop.f32.mrb[8].mxu1  ;;  %v215_v19 = vpop.f32.mrb[9].mxu0  ;;  %v451_v56 = vrot.slane %v450_v32, 2  ;;  %v472_v63 = vrot.slane %v471_v39, 2 }
  0xfc   :  { %v367_v22 = vmul.f32 %v326_v18, %v32_v6  ;;  %v366_v23 = vmul.f32 %v215_v19, %v31_v7  ;;  %v328_v24 = vpop.f32.mrb[9].mxu1  ;;  %v486_v5 = vrot.slane %v485_v45, 2  ;;  %v445_v21 = vadd.f32 %v444_v62, %v443_v37 }
  0xfd   :  { %v384_v28 = vadd.f32 %v383_v4, %v365_v17  ;;  %v368_v29 = vmul.f32 %v328_v24, %v33_v13  ;;  %v458_v4 = vrot.slane %v457_v44, 2  ;;  %v452_v15 = vadd.f32 %v451_v56, %v450_v32  ;;  %v43_v17 = vld [vmem:[%s949_s0 + $0xe8] sm:$0xff] }
  0xfe   :  { %v410_v34 = vadd.f32 %v409_v10, %v367_v22  ;;  %v397_v35 = vadd.f32 %v396_v11, %v366_v23  ;;  %v219_v38 = vpop.f32.mrb[10].mxu0  ;;  %v438_v10 = vadd.f32 %v437_v47, %v436_v26  ;;  %v466_v11 = vadd.f32 %v465_v51, %v464_v27  ;;  %v45_v23 = vld [vmem:[%s949_s0 + $0xf8] sm:$0xff] }
  0xff   :  { %v423_v40 = vadd.f32 %v422_v16, %v368_v29  ;;  %v369_v41 = vmul.f32 %v219_v38, %v34_v25  ;;  %v332_v42 = vpop.f32.mrb[10].mxu1  ;;  %v221_v43 = vpop.f32.mrb[11].mxu0  ;;  %v480_v16 = vadd.f32 %v479_v57, %v478_v33  ;;  %v473_v22 = vadd.f32 %v472_v63, %v471_v39 }
 0x100   :  { %v371_v48 = vmul.f32 %v332_v42, %v36_v30  ;;  %v370_v49 = vmul.f32 %v221_v43, %v35_v31  ;;  %v334_v50 = vpop.f32.mrb[11].mxu1  ;;  %v487_v29 = vadd.f32 %v486_v5, %v485_v45  ;;  %v439_v30 = vrot.slane %v438_v10, 1 }
 0x101   :  { %v385_v52 = vadd.f32 %v384_v28, %v369_v41  ;;  %v372_v53 = vmul.f32 %v334_v50, %v37_v36  ;;  %v459_v28 = vadd.f32 %v458_v4, %v457_v44  ;;  %v467_v31 = vrot.slane %v466_v11, 1 }
 0x102   :  { %v411_v58 = vadd.f32 %v410_v34, %v371_v48  ;;  %v398_v59 = vadd.f32 %v397_v35, %v370_v49  ;;  %v225_v60 = vpop.f32.mrb[12].mxu0  ;;  %v453_v38 = vrot.slane %v452_v15, 1  ;;  %v481_v36 = vrot.slane %v480_v16, 1 }
 0x103   :  { %v424_v0 = vadd.f32 %v423_v40, %v372_v53  ;;  %v373_v1 = vmul.f32 %v225_v60, %v38_v46  ;;  %v338_v2 = vpop.f32.mrb[12].mxu1  ;;  %v227_v3 = vpop.f32.mrb[13].mxu0  ;;  %v446_v41 = vrot.slane %v445_v21, 1  ;;  %v474_v42 = vrot.slane %v473_v22, 1 }
 0x104   :  { %v375_v6 = vmul.f32 %v338_v2, %v40_v54  ;;  %v374_v7 = vmul.f32 %v227_v3, %v39_v55  ;;  %v340_v8 = vpop.f32.mrb[13].mxu1  ;;  %v460_v49 = vrot.slane %v459_v28, 1  ;;  %v488_v50 = vrot.slane %v487_v29, 1 }
 0x105   :  { %v386_v12 = vadd.f32 %v385_v52, %v373_v1  ;;  %v376_v13 = vmul.f32 %v340_v8, %v41_v61  ;;  %v440_v46 = vadd.f32 %v439_v30, %v438_v10  ;;  %v468_v44 = vadd.f32 %v467_v31, %v466_v11 }
 0x106   :  { %v412_v18 = vadd.f32 %v411_v58, %v375_v6  ;;  %v399_v19 = vadd.f32 %v398_v59, %v374_v7  ;;  %v231_v20 = vpop.f32.mrb[14].mxu0  ;;  %v454_v52 = vadd.f32 %v453_v38, %v452_v15  ;;  %v482_v53 = vadd.f32 %v481_v36, %v480_v16 }
 0x107   :  { %v425_v24 = vadd.f32 %v424_v0, %v376_v13  ;;  %v377_v25 = vmul.f32 %v231_v20, %v42_v9  ;;  %v344_v26 = vpop.f32.mrb[14].mxu1  ;;  %v233_v27 = vpop.f32.mrb[15].mxu0  ;;  %v447_v57 = vadd.f32 %v446_v41, %v445_v21  ;;  %v475_v58 = vadd.f32 %v474_v42, %v473_v22 }
 0x108   :  { %v379_v32 = vmul.f32 %v344_v26, %v44_v14  ;;  %v378_v33 = vmul.f32 %v233_v27, %v43_v17  ;;  %v346_v34 = vpop.f32.mrb[15].mxu1  ;;  %v461_v61 = vadd.f32 %v460_v49, %v459_v28  ;;  %v489_v62 = vadd.f32 %v488_v50, %v487_v29 }
 0x109   :  { %v387_v35 = vadd.f32 %v386_v12, %v377_v25  ;;  %v380_v37 = vmul.f32 %v346_v34, %v45_v23  ;;  %v490_v2 = vadd.f32 %v468_v44, %v440_v46  ;;  %v492_v5 = vadd.f32 %v482_v53, %v454_v52 }
 0x10a   :  { %v413_v39 = vadd.f32 %v412_v18, %v379_v32  ;;  %v400_v40 = vadd.f32 %v399_v19, %v378_v33  ;;  %v491_v7 = vadd.f32 %v475_v58, %v447_v57  ;;  %v493_v10 = vadd.f32 %v489_v62, %v461_v61 }
 0x10b   :  { %v388_v43 = vrot.slane %v387_v35, 4  ;;  %v426_v48 = vadd.f32 %v425_v24, %v380_v37  ;;  %v498_v14 = vmul.f32 0.5, %v490_v2  ;;  %v500_v17 = vmul.f32 0.5, %v492_v5 }
 0x10c   :  { %v414_v45 = vrot.slane %v413_v39, 4  ;;  %v401_v47 = vrot.slane %v400_v40, 4  ;;  %v499_v19 = vmul.f32 0.5, %v491_v7  ;;  %v501_v22 = vmul.f32 0.5, %v493_v10 }
 0x10d   :  { %v389_v51 = vadd.f32 %v388_v43, %v387_v35  ;;  %v427_v54 = vrot.slane %v426_v48, 4  ;;  %v645_v42 = vmov 1966171168  }
 0x10e   :  { %v415_v55 = vadd.f32 %v414_v45, %v413_v39  ;;  %v402_v56 = vadd.f32 %v401_v47, %v400_v40  ;;  %v537_v43 = vunpack.c.l.s4 %v645_v42 }
 0x10f   :  { %v390_v59 = vrot.slane %v389_v51, 2  ;;  %v428_v60 = vadd.f32 %v427_v54, %v426_v48  ;;  %v539_v48 = vlaneseq }
 0x110   :  { %v416_v63 = vrot.slane %v415_v55, 2  ;;  %v403_v0 = vrot.slane %v402_v56, 2  ;;  %v538_v49 = vunpack.c.0.s8 %v537_v43 }
 0x111   :  { %v391_v1 = vadd.f32 %v390_v59, %v389_v51  ;;  %v429_v3 = vrot.slane %v428_v60, 2  ;;  %v540_v50 = vshrl.u32 %v539_v48, 7  ;;  %vm561_vm3 = vcmp.lt.s32.totalorder %v539_v48, 512 }
 0x112   :  { %v417_v4 = vadd.f32 %v416_v63, %v415_v55  ;;  %v404_v6 = vadd.f32 %v403_v0, %v402_v56 }
 0x113   :  { %v392_v8 = vrot.slane %v391_v1, 1  ;;  %v430_v9 = vadd.f32 %v429_v3, %v428_v60  ;;  %v541_v45 = vsub.s32 %v538_v49, %v540_v50 }
 0x114   :  { %v418_v11 = vrot.slane %v417_v4, 1  ;;  %v405_v12 = vrot.slane %v404_v6, 1 }
 0x115   :  { %v393_v13 = vadd.f32 %v392_v8, %v391_v1  ;;  %v431_v15 = vrot.slane %v430_v9, 1 }
 0x116   :  { %v419_v16 = vadd.f32 %v418_v11, %v417_v4  ;;  %v406_v18 = vadd.f32 %v405_v12, %v404_v6 }
 0x117   :  { %v494_v20 = vmul.f32 0.5, %v393_v13  ;;  %v432_v21 = vadd.f32 %v431_v15, %v430_v9 }
 0x118   :  { %v496_v23 = vmul.f32 0.5, %v419_v16  ;;  %v495_v24 = vmul.f32 0.5, %v406_v18 }
 0x119   :  { %v502_v25 = vadd.f32 %v498_v14, %v494_v20  ;;  %v497_v26 = vmul.f32 0.5, %v432_v21 }
 0x11a   :  { %v504_v27 = vadd.f32 %v500_v17, %v496_v23  ;;  %v503_v28 = vadd.f32 %v499_v19, %v495_v24 }
 0x11b   :  { %v588_v29 = vmul.f32 -1.442695, %v502_v25  ;;  %v505_v30 = vadd.f32 %v501_v22, %v497_v26 }
 0x11c   :  { %v590_v31 = vmul.f32 -1.442695, %v504_v27  ;;  %v589_v32 = vmul.f32 -1.442695, %v503_v28 }
 0x11d   :  { %627 = vpow2.f32 %v588_v29  ;;  %v591_v33 = vmul.f32 -1.442695, %v505_v30 }
 0x11e   :  { %629 = vpow2.f32 %v590_v31 }
 0x11f   :  { %631 = vpow2.f32 %v589_v32 }
 0x120   :  { %633 = vpow2.f32 %v591_v33 }
 0x127   :  { %v628_v34 = vpop.eup %627 }
 0x128   :  { %v630_v35 = vpop.eup %629  ;;  %v518_v38 = vadd.f32 1.0, %v628_v34 }
 0x129   :  { %v632_v36 = vpop.eup %631  ;;  %v520_v37 = vadd.f32 1.0, %v630_v35 }
 0x12a   :  { %v634_v39 = vpop.eup %633  ;;  %635 = vrcp.f32 %v518_v38  ;;  %v519_v40 = vadd.f32 1.0, %v632_v36 }
 0x12b   :  { %637 = vrcp.f32 %v520_v37  ;;  %v521_v41 = vadd.f32 1.0, %v634_v39 }
 0x12c   :  { %639 = vrcp.f32 %v519_v40 }
 0x12d   :  { %641 = vrcp.f32 %v521_v41 }
 0x134   :  { %v636_v46 = vpop.eup %635 }
 0x135   :  { %v638_v44 = vpop.eup %637 }
 0x136   :  { %v640_v47 = vpop.eup %639 }
 0x137   :  { %v642_v51 = vpop.eup %641  ;;  %v534_v52 = vcombine.low %v636_v46, %v640_v47 }
 0x138   :  { %v535_v53 = vcombine.low %v638_v44, %v642_v51 }
 0x139   :  { %v542_v54 = vrot.slane %v534_v52, %v541_v45 }
 0x13a   :  { %v549_v55 = vrot.slane %v535_v53, %v541_v45 }
 0x13c   :  { %v550_v56 = vcombine.low %v542_v54, %v549_v55 }
 0x13e   :  { %v557_v57 = vrot.slane %v550_v56, %v541_v45 }
 0x140   :  { %563 = vst.msk [vmem:[%s952_s3] sm:$0xf] %vm561_vm3, %v557_v57 }

</bundles_post_ra>
